<compile_context>
chip_gen: v5e
topology: v5e:2x2
jax: 0.10.0
libtpu: 0.0.40
codegen_flags: <defaults>
</compile_context>

<pallas_src>
import functools

import jax
import jax.numpy as jnp
from jax.experimental import pallas as pl
from jax.experimental.pallas import tpu as pltpu


def _round_up(x, m):
    return ((x + m - 1) // m) * m


# ---------------------------------------------------------------------------
# Kernel
# ---------------------------------------------------------------------------
def attention_kernel(v_ref, qh_ref, w1v_ref, w2_ref, o_ref, *, bb, kp, k_valid):
    """One batch block: softmax_k( w2 . ReLU(v @ W1v + q @ W1q + b1) )."""
    # v_ref  : [bb*kp, Dv] f32   flattened (batch, object) rows
    # qh_ref : [bb, H]     f32   precomputed q @ W1q + b1
    # w1v_ref: [Dv, H]     bf16  constant across the grid
    # w2_ref : [1, H]      f32   constant across the grid
    # o_ref  : [bb, kp]    f32   softmax weights, K on the lane axis
    vb = v_ref[...].astype(jnp.bfloat16)            # VALU cast, hidden under the MXU
    h = jnp.dot(vb, w1v_ref[...], preferred_element_type=jnp.float32)   # [bb*kp, H]
    h = h.reshape(bb, kp, h.shape[-1])              # relayout-free: kp % 8 == 0
    # joint = ReLU( v@W1v + (q@W1q + b1) ), q-term broadcast over the K axis (f32 VPU).
    h = jnp.maximum(h + qh_ref[...][:, None, :], 0.0)
    # TODO(synk): dropout runs in inference mode (identity).

    # Second layer has a single output column -> VPU multiply + XLU lane reduction
    # instead of an N=1 MXU matmul.  (b2 cancels in the softmax.)  The f32 h / h*w2
    # intermediates are accounted for in the VMEM budget that sizes block_b.
    logits = jnp.sum(h * w2_ref[...][None, :, :], axis=-1)               # [bb, kp]

    if kp != k_valid:   # static: mask padded object slots out of the softmax
        kidx = jax.lax.broadcasted_iota(jnp.int32, (bb, kp), 1)
        logits = jnp.where(kidx < k_valid, logits, -1e30)

    # Numerically-stable softmax over the K (objects) axis; EUP fast-path reciprocal.
    m = jnp.max(logits, axis=-1, keepdims=True)
    e = jnp.exp(logits - m)
    denom = jnp.sum(e, axis=-1, keepdims=True)
    o_ref[...] = (e * pl.reciprocal(denom, approx=True)).astype(o_ref.dtype)


# ---------------------------------------------------------------------------
# Planning helpers (generation-aware tile / VMEM sizing)
# ---------------------------------------------------------------------------
def _vmem_capacity_bytes():
    try:
        return int(pltpu.get_tpu_info().vmem_capacity_bytes)
    except Exception:
        return 64 * 1024 * 1024            # v7x per-core size: a safe floor everywhere


def _vmem_footprint_bytes(bb, kp, dv, h, v_bufs):
    m = bb * kp
    v_bytes = v_bufs * m * dv * 4          # f32 v blocks (multi-buffered stream)
    qh_bytes = 2 * bb * h * 4              # double-buffered q projection rows
    w_bytes = dv * h * 2 + h * 4           # W1v (bf16) + w2 row (effectively constant)
    out_bytes = 2 * bb * kp * 4
    tmp_bytes = 2 * m * h * 4              # h and the h*w2 product, conservatively resident
    return v_bytes + qh_bytes + w_bytes + out_bytes + tmp_bytes


def _plan_blocks(b, kp, dv, h, block_b_hint=None):
    """Pick (block_b, v_buffer_count, vmem_limit_bytes) for this chip / shape."""
    vmem_cap = _vmem_capacity_bytes()
    budget = vmem_cap // 2                 # leave headroom for compiler scratch / regalloc
    v_bufs = 3 if h < 256 else 2           # deeper v buffering only while DMA-exposed

    if block_b_hint is not None:
        bb = max(8, _round_up(int(block_b_hint), 8))
    else:
        # Rows per MXU call: target ~512-1024, a multiple of the 256-wide MXU pass when cheap.
        bb = _round_up(max(1, pl.cdiv(512, kp)), 8)
        while (bb * kp) % 256 != 0 and bb * kp < 2048:
            bb += 8

    cap = _round_up(b, 8)                  # never (much) larger than the batch
    if block_b_hint is None and b >= 32:
        # Keep >=4 grid steps when the batch allows it, so dimension_semantics=("parallel",)
        # can shard the grid across v7x's two TensorCores.
        cap = min(cap, max(8, _round_up(pl.cdiv(b, 4), 8)))
    bb = min(bb, cap)

    # Shrink until the per-step VMEM footprint fits the budget.
    while bb > 8 and _vmem_footprint_bytes(bb, kp, dv, h, v_bufs) > budget:
        bb -= 8
    if v_bufs == 3 and _vmem_footprint_bytes(bb, kp, dv, h, v_bufs) > budget:
        v_bufs = 2

    # Prefer a bb that tiles the batch exactly -> no partial edge blocks anywhere.
    if b % bb != 0:
        exact = None
        d = (min(bb, b) // 8) * 8
        while d >= 8:
            if b % d == 0:
                exact = d
                break
            d -= 8
        if exact is not None:
            bb = exact
        elif b <= bb or _vmem_footprint_bytes(b, kp, dv, h, v_bufs) <= budget:
            bb = b             # full-extent blocks: second-to-last dims equal the array dims
        # else: keep bb; only the v stream sees a partial tail block (rows past B are
        # unspecified, row-independent, and sliced away by the wrapper).

    vmem_limit = int(min(vmem_cap * 3 // 4,
                         max(32 * 1024 * 1024,
                             2 * _vmem_footprint_bytes(bb, kp, dv, h, v_bufs))))
    return bb, v_bufs, vmem_limit


@functools.lru_cache(maxsize=None)
def _pipeline_mode_supported():
    """One-time probe: does this JAX build accept pl.Buffered pipeline modes on TPU?

    Probing once (instead of a try/except around the real call) keeps real lowering
    bugs visible on the main path.
    """
    def _k(a_ref, b_ref, o_ref):
        o_ref[...] = a_ref[...] + b_ref[...]

    try:
        x = jnp.zeros((8, 128), jnp.float32)
        out = pl.pallas_call(
            _k,
            out_shape=jax.ShapeDtypeStruct((8, 128), jnp.float32),
            grid_spec=pltpu.PrefetchScalarGridSpec(
                num_scalar_prefetch=0,
                grid=(1,),
                in_specs=[
                    pl.BlockSpec((8, 128), lambda i: (0, 0),
                                 pipeline_mode=pl.Buffered(buffer_count=1)),
                    pl.BlockSpec((8, 128), lambda i: (0, 0),
                                 pipeline_mode=pl.Buffered(buffer_count=3)),
                ],
                out_specs=pl.BlockSpec((8, 128), lambda i: (0, 0)),
            ),
        )(x, x)
        jax.block_until_ready(out)
        return True
    except Exception:
        return False


def _spec(shape, index_map, pm=None):
    if pm is None:
        return pl.BlockSpec(shape, index_map)
    return pl.BlockSpec(shape, index_map, pipeline_mode=pm)


def _build_attention_call(g, bb, kp, dv, h, k_valid, v_bufs, use_pm, vmem_limit):
    w_pm = pl.Buffered(buffer_count=1) if use_pm else None       # constants: 1 buffer
    v_pm = None
    if use_pm and v_bufs != 2 and g > 2:                         # deeper buffering only when useful
        v_pm = pl.Buffered(buffer_count=v_bufs)
    kernel = functools.partial(attention_kernel, bb=bb, kp=kp, k_valid=k_valid)
    return pl.pallas_call(
        kernel,
        out_shape=jax.ShapeDtypeStruct((g * bb, kp), jnp.float32),
        grid_spec=pltpu.PrefetchScalarGridSpec(
            num_scalar_prefetch=0,
            grid=(g,),
            in_specs=[
                _spec((bb * kp, dv), lambda i: (i, 0), v_pm),    # v rows (streamed, f32)
                _spec((bb, h), lambda i: (i, 0)),                # q projection rows
                _spec((dv, h), lambda i: (0, 0), w_pm),          # W1v (bf16, constant)
                _spec((1, h), lambda i: (0, 0), w_pm),           # w2 row (constant)
            ],
            out_specs=pl.BlockSpec((bb, kp), lambda i: (i, 0)),
        ),
        compiler_params=pltpu.CompilerParams(
            dimension_semantics=("parallel",),   # batch grid can shard over v7x's 2 TCs
            vmem_limit_bytes=vmem_limit,
        ),
    )


# ---------------------------------------------------------------------------
# Wrapper
# ---------------------------------------------------------------------------
def attention_forward(v, q, params, *, block_b=None):
    """v: [B, K, Dv] f32, q: [B, Dq] f32 -> softmax attention weights [B, K, 1] f32."""
    B, K, Dv = v.shape
    w1v, w1q, b1, w2, b2 = params          # b2 cancels in softmax -> not passed to the kernel
    H = w1v.shape[1]
    Kp = _round_up(K, 8)

    # Hoist the q projection: one XLA matmul at default (single-bf16-pass) precision —
    # the in-kernel path is bf16 anyway, so HIGHEST precision here would be wasted.
    qh = (jnp.dot(q, w1q) + b1).astype(jnp.float32)

    if Kp == K:
        # Zero-copy path: merging (B, K) is layout-preserving, so this reshape is free in
        # XLA — v is never re-written to HBM; the kernel casts to bf16 in VMEM.
        v_flat = v.astype(jnp.float32).reshape(B * K, Dv)
    else:
        # TODO(synk): K % 8 != 0 still takes one padded f32 copy of v so the in-kernel
        # rows <-> [bb, K] reshape stays relayout-free; padded slots are masked in softmax.
        v_flat = jnp.pad(v.astype(jnp.float32),
                         ((0, 0), (0, Kp - K), (0, 0))).reshape(B * Kp, Dv)

    w1v_b = w1v.astype(jnp.bfloat16)
    w2_row = w2.reshape(1, H).astype(jnp.float32)

    bb, v_bufs, vmem_limit = _plan_blocks(B, Kp, Dv, H, block_b)
    g = pl.cdiv(B, bb)

    # Pad the (small) q-projection rows so its blocks are always full.  The big v stream is
    # left unpadded; only its tail block (if B % bb != 0) is partial.
    if g * bb != B:
        qh = jnp.pad(qh, ((0, g * bb - B), (0, 0)))

    use_pm = _pipeline_mode_supported()
    call = _build_attention_call(g, bb, Kp, Dv, H, K, v_bufs, use_pm, vmem_limit)
    out = call(v_flat, qh, w1v_b, w2_row)
    return out[:B, :K].reshape(B, K, 1)


# ---------------------------------------------------------------------------
# Params / reference
# ---------------------------------------------------------------------------
def init_params(key, v_dim, q_dim, num_hid):
    """Deterministic synthetic init; applies weight_norm(dim=None) reparam."""
    k1, k2, k3, k4, k5, k6 = jax.random.split(key, 6)
    in_dim = v_dim + q_dim

    # Layer 1: weight_norm(Linear(in_dim, num_hid), dim=None)
    v1 = jax.random.normal(k1, (num_hid, in_dim), jnp.float32) * 0.1
    g1 = 1.0 + 0.05 * jax.random.normal(k2, (), jnp.float32)
    w1_eff = g1 * v1 / jnp.linalg.norm(v1)              # [num_hid, in_dim]
    b1 = 0.1 * jax.random.normal(k3, (num_hid,), jnp.float32)

    # Layer 2: weight_norm(Linear(num_hid, 1), dim=None)
    v2 = jax.random.normal(k4, (1, num_hid), jnp.float32) * 0.1
    g2 = 1.0 + 0.05 * jax.random.normal(k5, (), jnp.float32)
    w2_eff = g2 * v2 / jnp.linalg.norm(v2)              # [1, num_hid]
    b2 = 0.1 * jax.random.normal(k6, (1,), jnp.float32)

    # Split W1 across the concat axis, transpose for x @ W layout.
    w1v = w1_eff[:, :v_dim].T            # [v_dim, num_hid]
    w1q = w1_eff[:, v_dim:].T            # [q_dim, num_hid]
    b1r = b1.reshape(1, num_hid)         # [1, num_hid]
    w2 = w2_eff.T                        # [num_hid, 1]
    b2r = b2.reshape(1, 1)               # [1, 1]
    return w1v, w1q, b1r, w2, b2r


def attention_reference(v, q, params):
    """Pure-JAX reference mirroring the PyTorch forward (eval mode)."""
    w1v, w1q, b1, w2, b2 = params
    hp = jax.lax.Precision.HIGHEST
    h = jnp.maximum(jnp.einsum("bkd,dh->bkh", v, w1v, precision=hp)
                    + jnp.einsum("bd,dh->bh", q, w1q, precision=hp)[:, None, :] + b1, 0.0)
    logits = jnp.einsum("bkh,ho->bko", h, w2, precision=hp) + b2[0, 0]
    return jax.nn.softmax(logits, axis=1)


if __name__ == "__main__":
    B, K, V_DIM, Q_DIM, NUM_HID = 2, 8, 16, 16, 32

    key = jax.random.PRNGKey(0)
    kv, kq, kparam = jax.random.split(key, 3)
    v = jax.random.normal(kv, (B, K, V_DIM), jnp.float32)
    q = jax.random.normal(kq, (B, Q_DIM), jnp.float32)
    params = init_params(kparam, V_DIM, Q_DIM, NUM_HID)

    out = attention_forward(v, q, params)
    out = jax.block_until_ready(out)

    # Mixed-precision reference mirroring the kernel's bf16 MXU inputs (v/W1v and the
    # default-precision q projection).  Tolerances allow the EUP approx-reciprocal.
    w1v, w1q, b1, w2, b2 = params
    rcast = lambda x: x.astype(jnp.bfloat16).astype(jnp.float32)
    ref_mixed = attention_reference(rcast(v), rcast(q),
                                    (rcast(w1v), rcast(w1q), b1, w2, b2))
    ref_f32 = attention_reference(v, q, params)

    assert out.shape == (B, K, 1)
    assert bool(jnp.all(jnp.isfinite(out)))
    assert jnp.allclose(out, ref_mixed, atol=3e-3, rtol=3e-3)    # design parity (bf16 inputs)
    assert jnp.allclose(out, ref_f32, atol=5e-3, rtol=5e-3)      # semantic parity
    assert jnp.allclose(jnp.sum(out, axis=1), 1.0, atol=5e-3)    # valid softmax over K

    print("KERNEL_OK")
</pallas_src>

<mosaic_0001>
module attributes {stable_mosaic.version = 11 : i64} {
  func.func @_k(%arg0: i32, %arg1: memref<8x128xf32, #tpu.memory_space<vmem>>, %arg2: memref<8x128xf32, #tpu.memory_space<vmem>>, %arg3: memref<8x128xf32, #tpu.memory_space<vmem>>) attributes {dimension_semantics = [#tpu.dimension_semantics<arbitrary>], iteration_bounds = array<i64: 1>, scalar_prefetch = 0 : i64, scratch_operands = 0 : i64, tpu.core_type = #tpu.core_type<tc>, window_params = [{pipeline_mode = #tpu.pipeline_mode<synchronous>, transform_indices = @transform_0, window_bounds = array<i64: 8, 128>}, {pipeline_mode = #tpu.pipeline_mode<synchronous>, transform_indices = @transform_1, window_bounds = array<i64: 8, 128>}, {pipeline_mode = #tpu.pipeline_mode<synchronous>, transform_indices = @transform_2, window_bounds = array<i64: 8, 128>}]} {
    %c0 = arith.constant 0 : index
    %c0_0 = arith.constant 0 : index
    %0 = vector.load %arg1[%c0, %c0_0] : memref<8x128xf32, #tpu.memory_space<vmem>>, vector<8x128xf32>
    %c0_1 = arith.constant 0 : index
    %c0_2 = arith.constant 0 : index
    %1 = vector.load %arg2[%c0_1, %c0_2] : memref<8x128xf32, #tpu.memory_space<vmem>>, vector<8x128xf32>
    %2 = arith.addf %0, %1 : vector<8x128xf32>
    %c0_3 = arith.constant 0 : index
    %c0_4 = arith.constant 0 : index
    %3 = vector.load %arg3[%c0_3, %c0_4] : memref<8x128xf32, #tpu.memory_space<vmem>>, vector<8x128xf32>
    tpu.vector_store %arg3[%c0_3, %c0_4], %2 {strides = array<i32>} : memref<8x128xf32, #tpu.memory_space<vmem>>, vector<8x128xf32>,
    return
  }
  func.func @transform_0(%arg0: i32) -> (i32, i32) {
    %c0_i32 = arith.constant 0 : i32
    %c0_i32_0 = arith.constant 0 : i32
    %c0_i32_1 = arith.constant 0 : i32
    return %c0_i32, %c0_i32_0 : i32, i32
  }
  func.func @transform_1(%arg0: i32) -> (i32, i32) {
    %c0_i32 = arith.constant 0 : i32
    %c0_i32_0 = arith.constant 0 : i32
    %c0_i32_1 = arith.constant 0 : i32
    return %c0_i32, %c0_i32_0 : i32, i32
  }
  func.func @transform_2(%arg0: i32) -> (i32, i32) {
    %c0_i32 = arith.constant 0 : i32
    %c0_i32_0 = arith.constant 0 : i32
    %c0_i32_1 = arith.constant 0 : i32
    return %c0_i32, %c0_i32_0 : i32, i32
  }
}

module attributes {stable_mosaic.version = 11 : i64} {
  func.func @attention_kernel(%arg0: i32, %arg1: memref<16x16xf32, #tpu.memory_space<vmem>>, %arg2: memref<2x32xf32, #tpu.memory_space<vmem>>, %arg3: memref<16x32xbf16, #tpu.memory_space<vmem>>, %arg4: memref<1x32xf32, #tpu.memory_space<vmem>>, %arg5: memref<2x8xf32, #tpu.memory_space<vmem>>) attributes {dimension_semantics = [#tpu.dimension_semantics<parallel>], iteration_bounds = array<i64: 1>, scalar_prefetch = 0 : i64, scratch_operands = 0 : i64, tpu.core_type = #tpu.core_type<tc>, window_params = [{transform_indices = @transform_0, window_bounds = array<i64: 16, 16>}, {transform_indices = @transform_1, window_bounds = array<i64: 2, 32>}, {pipeline_mode = #tpu.pipeline_mode<synchronous>, transform_indices = @transform_2, window_bounds = array<i64: 16, 32>}, {pipeline_mode = #tpu.pipeline_mode<synchronous>, transform_indices = @transform_3, window_bounds = array<i64: 1, 32>}, {transform_indices = @transform_4, window_bounds = array<i64: 2, 8>}]} {
    %c0 = arith.constant 0 : index
    %c0_0 = arith.constant 0 : index
    %0 = vector.load %arg1[%c0, %c0_0] : memref<16x16xf32, #tpu.memory_space<vmem>>, vector<16x16xf32>
    %1 = arith.truncf %0 : vector<16x16xf32> to vector<16x16xbf16>
    %c0_1 = arith.constant 0 : index
    %c0_2 = arith.constant 0 : index
    %2 = vector.load %arg3[%c0_1, %c0_2] : memref<16x32xbf16, #tpu.memory_space<vmem>>, vector<16x32xbf16>
    %cst = arith.constant dense<0.000000e+00> : vector<16x32xf32>
    %3 = tpu.matmul %1, %2, %cst {dimension_numbers = #tpu.dot_dimension_numbers<[1], [0], [0], [1], [0, 0, 1, 1], [], []>} : vector<16x16xbf16>, vector<16x32xbf16>, vector<16x32xf32> -> vector<16x32xf32>
    %4 = vector.shape_cast %3 : vector<16x32xf32> to vector<2x8x32xf32>
    %c0_3 = arith.constant 0 : index
    %c0_4 = arith.constant 0 : index
    %5 = vector.load %arg2[%c0_3, %c0_4] : memref<2x32xf32, #tpu.memory_space<vmem>>, vector<2x32xf32>
    %6 = vector.shape_cast %5 : vector<2x32xf32> to vector<2x1x32xf32>
    %7 = vector.broadcast %6 : vector<2x1x32xf32> to vector<2x8x32xf32>
    %8 = arith.addf %4, %7 : vector<2x8x32xf32>
    %cst_5 = arith.constant 0.000000e+00 : f32
    %9 = vector.broadcast %cst_5 : f32 to vector<2x8x32xf32>
    %10 = arith.maximumf %8, %9 : vector<2x8x32xf32>
    %c0_6 = arith.constant 0 : index
    %c0_7 = arith.constant 0 : index
    %11 = vector.load %arg4[%c0_6, %c0_7] : memref<1x32xf32, #tpu.memory_space<vmem>>, vector<1x32xf32>
    %12 = vector.shape_cast %11 : vector<1x32xf32> to vector<1x1x32xf32>
    %13 = vector.broadcast %12 : vector<1x1x32xf32> to vector<2x8x32xf32>
    %14 = arith.mulf %10, %13 : vector<2x8x32xf32>
    %cst_8 = arith.constant dense<0.000000e+00> : vector<2x8xf32>
    %15 = vector.multi_reduction <add>, %14, %cst_8 [2] : vector<2x8x32xf32> to vector<2x8xf32>
    %cst_9 = arith.constant dense<0xFF800000> : vector<2xf32>
    %16 = vector.multi_reduction <maximumf>, %15, %cst_9 [1] : vector<2x8xf32> to vector<2xf32>
    %17 = vector.shape_cast %16 : vector<2xf32> to vector<2x1xf32>
    %18 = vector.broadcast %17 : vector<2x1xf32> to vector<2x8xf32>
    %19 = arith.subf %15, %18 : vector<2x8xf32>
    %20 = math.exp %19 : vector<2x8xf32>
    %cst_10 = arith.constant dense<0.000000e+00> : vector<2xf32>
    %21 = vector.multi_reduction <add>, %20, %cst_10 [1] : vector<2x8xf32> to vector<2xf32>
    %22 = vector.shape_cast %21 : vector<2xf32> to vector<2x1xf32>
    %23 = tpu.reciprocal %22 {approx = true} : vector<2x1xf32> -> vector<2x1xf32>
    %24 = vector.broadcast %23 : vector<2x1xf32> to vector<2x8xf32>
    %25 = arith.mulf %20, %24 : vector<2x8xf32>
    %c0_11 = arith.constant 0 : index
    %c0_12 = arith.constant 0 : index
    %26 = vector.load %arg5[%c0_11, %c0_12] : memref<2x8xf32, #tpu.memory_space<vmem>>, vector<2x8xf32>
    tpu.vector_store %arg5[%c0_11, %c0_12], %25 {strides = array<i32>} : memref<2x8xf32, #tpu.memory_space<vmem>>, vector<2x8xf32>,
    return
  }
  func.func @transform_0(%arg0: i32) -> (i32, i32) {
    %c0_i32 = arith.constant 0 : i32
    %c0_i32_0 = arith.constant 0 : i32
    return %arg0, %c0_i32 : i32, i32
  }
  func.func @transform_1(%arg0: i32) -> (i32, i32) {
    %c0_i32 = arith.constant 0 : i32
    %c0_i32_0 = arith.constant 0 : i32
    return %arg0, %c0_i32 : i32, i32
  }
  func.func @transform_2(%arg0: i32) -> (i32, i32) {
    %c0_i32 = arith.constant 0 : i32
    %c0_i32_0 = arith.constant 0 : i32
    %c0_i32_1 = arith.constant 0 : i32
    return %c0_i32, %c0_i32_0 : i32, i32
  }
  func.func @transform_3(%arg0: i32) -> (i32, i32) {
    %c0_i32 = arith.constant 0 : i32
    %c0_i32_0 = arith.constant 0 : i32
    %c0_i32_1 = arith.constant 0 : i32
    return %c0_i32, %c0_i32_0 : i32, i32
  }
  func.func @transform_4(%arg0: i32) -> (i32, i32) {
    %c0_i32 = arith.constant 0 : i32
    %c0_i32_0 = arith.constant 0 : i32
    return %arg0, %c0_i32 : i32, i32
  }
}

</mosaic_0001>

<bundles_post_ra>
// kernel: tpu_custom_call.1
= control target key start
LH: loop header
LB: loop body
LE: loop exit
PB: predicated region body
PF: predicated region fallthrough
CT: control target
= control target key end

     0   :  { %7 = vsyncpa [#allocation3], 0  ;;  %s170_s0 = inlined_call_operand.hbm [shape: f32[8,128], index: 0, kind: input, shape index: {}]   ;;  %s171_s1 = inlined_call_operand.hbm [shape: f32[8,128], index: 1, kind: input, shape index: {}]   ;;  %s172_s2 = inlined_call_operand.hbm [shape: f32[8,128], index: 2, kind: output, shape index: {}]  }
   0x1   :  { %8 = vsyncpa [#allocation6], 0 }
   0x2   :  { %9 = vsyncpa [#allocation4], 0  ;;  %s15_s11 = sshll.u32 %s170_s0, 4  ;;  %s143_s12 = smov [#allocation2]   ;;  %s16_s11 = int_to_ptr.hbm [resolvable:$true] %s15_s11 }
   0x3   :  { %s17_s13 = sshll.u32 %s143_s12, 4  ;;  %s26_s16 = sshll.u32 %s171_s1, 4  ;;  %s18_s13 = int_to_ptr.vmem [resolvable:$true] %s17_s13  ;;  %s27_s16 = int_to_ptr.hbm [resolvable:$true] %s26_s16 }
   0x4   :  { %20 = dma.hbm_to_vmem [thread:$0]  %s16_s11, 128, %s18_s13, [#allocation3]  }
   0x5   :  { %s144_s17 = smov [#allocation5]  }
   0x6   :  { %s28_s18 = sshll.u32 %s144_s17, 4  ;;  %s29_s18 = int_to_ptr.vmem [resolvable:$true] %s28_s18 }
   0x7   :  { %31 = dma.hbm_to_vmem [thread:$0]  %s27_s16, 128, %s29_s18, [#allocation6]  }
   0x8   :  { %137 = dma.done.wait [#allocation3], 128  }
   0x9   :  { %138 = vsyncadd [#allocation3], 4294967168 }
   0xa   :  { %139 = dma.done.wait [#allocation6], 128  }
   0xb   :  { %140 = vsyncadd [#allocation6], 4294967168  ;;  %s145_s19 = smov [#allocation7]   ;;  %s51_s22 = sshll.u32 %s172_s2, 4  ;;  %v40_v0 = vld [vmem:[#allocation2] sm:$0xff]  ;;  %v41_v1 = vld [vmem:[#allocation5] sm:$0xff]  ;;  %s52_s22 = int_to_ptr.hbm [resolvable:$true] %s51_s22 }
   0xc   :  { %s49_s0 = sshll.u32 %s145_s19, 4  ;;  %v42_v2 = vadd.f32 %v41_v1, %v40_v0  ;;  %s50_s0 = int_to_ptr.vmem [resolvable:$true] %s49_s0 }
   0xe   :  { %43 = vst [vmem:[#allocation7] sm:$0xff] %v42_v2 }
   0xf   :  { %54 = dma.vmem_to_hbm [thread:$0]  %s50_s0, 128, %s52_s22, [#allocation4]  }
  0x10   :  { %141 = dma.done.wait [#allocation4], 128  }
  0x11   :  { %142 = vsyncadd [#allocation4], 4294967168 }
  0x12   :  { %59 = vsyncpa [#allocation3], 1 }
  0x13   :  { %60 = vsyncpa [#allocation6], 1 }
  0x14   :  { %61 = vsyncpa [#allocation4], 1 }

// kernel: tpu_custom_call.1
= control target key start
LH: loop header
LB: loop body
LE: loop exit
PB: predicated region body
PF: predicated region fallthrough
CT: control target
= control target key end

     0   :  { %9 = vsyncpa [#allocation3], 0  ;;  %s377_s0 = inlined_call_operand.hbm [shape: f32[16,16], index: 0, kind: input, shape index: {}]   ;;  %s378_s1 = inlined_call_operand.hbm [shape: f32[2,32], index: 1, kind: input, shape index: {}]   ;;  %s379_s2 = inlined_call_operand.hbm [shape: bf16[16,32], index: 2, kind: input, shape index: {}]   ;;  %s380_s3 = inlined_call_operand.vmem [shape: f32[1,32], index: 3, kind: input, shape index: {}]   ;;  %s381_s4 = inlined_call_operand.hbm [shape: f32[2,8], index: 4, kind: output, shape index: {}]  }
   0x1   :  { %10 = vsyncpa [#allocation6], 0  ;;  %s30_s17 = sshll.u32 %s378_s1, 4  ;;  %s31_s17 = int_to_ptr.hbm [resolvable:$true] %s30_s17 }
   0x2   :  { %11 = vsyncpa [#allocation4], 0  ;;  %s322_s18 = smov [#allocation5]   ;;  %s16_s22 = sshll.u32 %s377_s0, 4  ;;  %s17_s22 = int_to_ptr.hbm [resolvable:$true] %s16_s22 }
   0x3   :  { %s32_s19 = sshll.u32 %s322_s18, 4  ;;  %s323_s23 = smov [#allocation2]   ;;  %s33_s19 = int_to_ptr.vmem [resolvable:$true] %s32_s19 }
   0x4   :  { %35 = dma.hbm_to_vmem [thread:$0]  %s31_s17, 32, %s33_s19, [#allocation6]  }
   0x5   :  { %s18_s24 = sshll.u32 %s323_s23, 4  ;;  %s324_s25 = smov 128   ;;  %s19_s24 = int_to_ptr.vmem [resolvable:$true] %s18_s24 }
   0x6   :  { %s325_s26 = smov 8   ;;  %s40_s1 = sshll.u32 %s379_s2, 4  ;;  %s41_s1 = int_to_ptr.hbm [resolvable:$true] %s40_s1 }
   0x7   :  { %24 = dma.hbm_to_vmem [thread:$0]  %s17_s22, 256, %s19_s24, [#allocation3], %s324_s25, %s324_s25, %s325_s26  }
   0x8   :  { %s326_s29 = smov [#allocation7]   ;;  %s327_s5 = smov 64  }
   0x9   :  { %s42_s30 = sshll.u32 %s326_s29, 4  ;;  %s328_s6 = smov 4   ;;  %s43_s30 = int_to_ptr.vmem [resolvable:$true] %s42_s30 }
   0xa   :  { %48 = dma.hbm_to_vmem [thread:$0]  %s41_s1, 128, %s43_s30, [#allocation6], %s327_s5, %s327_s5, %s328_s6  }
   0xb   :  { %316 = dma.done.wait [#allocation3], 256  }
   0xc   :  { %317 = vsyncadd [#allocation3], 4294967040 }
   0xd   :  { %318 = dma.done.wait [#allocation6], 160  }
   0xe   :  { %319 = vsyncadd [#allocation6], 4294967136  ;;  %v200_v0 = vld [vmem:[#allocation7] sm:$0xff]  ;;  %v64_v1 = vld [vmem:[#allocation2] sm:$0xff]  ;;  %vm75_vm0 = vcmask 130048   ;;  %vm110_vm1 = vcmask 261120   ;;  %v119_v20 = vlaneseq }
   0xf   :  { %v65_v2 = vld [vmem:[#allocation2 + $0x8] sm:$0xff]  ;;  %86 = vmatpush.bf16.msra.mxu0 %v200_v0  ;;  %v93_v4 = vld [vmem:[#allocation5] sm:$0x3]  ;;  %v213_v8 = vld [vmem:[%s380_s3] ss:$0 sm:$0xff]  ;;  %vm123_vm2 = vcmask 1041409  }
  0x10   :  { %v66_v3 = vpack.c.bf16 %v65_v2, %v64_v1  ;;  %v96_v5 = vperm.slane %v93_v4, 0  ;;  %v95_v9 = vrot.slane %v93_v4, 1  ;;  %v120_v21 = vand.u32 127, %v119_v20  ;;  %s330_s3 = smov [#allocation8]   ;;  %s184_s10 = sshll.u32 %s381_s4, 4  ;;  %s185_s10 = int_to_ptr.hbm [resolvable:$true] %s184_s10 }
  0x11   :  { %vm126_vm3 = vcmask 58368   ;;  %v329_v27 = vmov 0   ;;  %s182_s7 = sshll.u32 %s330_s3, 4  ;;  %s183_s7 = int_to_ptr.vmem [resolvable:$true] %s182_s7 }
  0x12   :  { %199 = vmatmul.msk.bf16.vlgmr.msra.gmra.mxu0 %vm75_vm0, %v66_v3  ;;  %v97_v12 = vperm.slane %v95_v9, 0  ;;  %211 = vset.pattern.permute.xlu2 %v329_v27 }
  0x13   :  { %210 = vset.pattern.permute.xlu1 %v329_v27  ;;  %212 = vset.pattern.permute.xlu0 %v329_v27 }
  0x8f   :  { %v88_v6 = vpop.f32.mrf.mxu0 }
  0x90   :  { %v100_v7 = vadd.f32 %v96_v5, %v88_v6 }
  0x92   :  { %v102_v10 = vmax.f32 %v100_v7, 0.0 }
  0x94   :  { %v108_v11 = vmul.f32 %v213_v8, %v102_v10 }
  0x96   :  { %v111_v13 = vsel %vm110_vm1, %v108_v11, 0.0 }
  0x97   :  { %112 = vadd.xlane.f32.xlu0 %v111_v13  ;;  %v90_v14 = vpop.f32.mrf.mxu0 }
  0x98   :  { %v101_v15 = vadd.f32 %v97_v12, %v90_v14 }
  0x9a   :  { %v103_v16 = vmax.f32 %v101_v15, 0.0 }
  0x9c   :  { %v109_v17 = vmul.f32 %v213_v8, %v103_v16 }
  0x9e   :  { %v114_v18 = vsel %vm110_vm1, %v109_v17, 0.0 }
  0x9f   :  { %115 = vadd.xlane.f32.xlu0 %v114_v18 }
 0x10a   :  { %v113_v19 = vpop.xlane.xlu0 %112 }
 0x10b   :  { %v121_v23 = vperm.slane %v113_v19, %v120_v21 }
 0x112   :  { %v116_v22 = vpop.xlane.xlu0 %115 }
 0x113   :  { %v122_v24 = vperm.slane %v116_v22, %v120_v21 }
 0x115   :  { %v124_v25 = vsel %vm123_vm2, %v122_v24, %v121_v23 }
 0x116   :  { %v127_v26 = vsel %vm126_vm3, %v124_v25, -inf }
 0x117   :  { %128 = vmax.xlane.f32.xlu1 %v127_v26 }
 0x18a   :  { %v129_v28 = vpop.xlane.xlu1 %128 }
 0x18b   :  { %v131_v29 = vperm.slane %v129_v28, 0  ;;  %v132_v30 = vperm.slane %v129_v28, 1 }
 0x18d   :  { %v135_v31 = vsub.f32 %v113_v19, %v131_v29  ;;  %v136_v32 = vsub.f32 %v116_v22, %v132_v30 }
 0x18f   :  { %v137_v33 = vmul.f32 1.442695, %v135_v31  ;;  %v139_v34 = vmul.f32 1.442695, %v136_v32 }
 0x191   :  { %214 = vpow2.f32 %v137_v33 }
 0x192   :  { %216 = vpow2.f32 %v139_v34 }
 0x197   :  { %v215_v35 = vpop.eup %214 }
 0x198   :  { %v217_v36 = vpop.eup %216  ;;  %144 = vperm.xlu1 %210, %v215_v35  }
 0x199   :  { %147 = vperm.xlu2 %211, %v217_v36  }
 0x1f3   :  { %v148_v37 = vpop.permute.xlu2 %147 }
 0x1f4   :  { %v150_v39 = vperm.slane %v148_v37, %v120_v21 }
 0x20a   :  { %v145_v38 = vpop.permute.xlu1 %144 }
 0x20b   :  { %v149_v40 = vperm.slane %v145_v38, %v120_v21 }
 0x20d   :  { %v151_v41 = vsel %vm123_vm2, %v150_v39, %v149_v40 }
 0x20e   :  { %v153_v42 = vsel %vm126_vm3, %v151_v41, 0.0 }
 0x20f   :  { %154 = vadd.xlane.f32.xlu2 %v153_v42 }
 0x282   :  { %v155_v43 = vpop.xlane.xlu2 %154 }
 0x283   :  { %218 = vrcp.f32 %v155_v43 }
 0x289   :  { %v219_v44 = vpop.eup %218 }
 0x28a   :  { %v159_v45 = vperm.slane %v219_v44, 1  ;;  %v158_v46 = vperm.slane %v219_v44, 0 }
 0x28c   :  { %v163_v47 = vmul.f32 %v217_v36, %v159_v45  ;;  %v162_v48 = vmul.f32 %v215_v35, %v158_v46 }
 0x28e   :  { %170 = vperm.xlu1 %210, %v163_v47   ;;  %167 = vperm.xlu0 %212, %v162_v48  }
 0x300   :  { %v171_v49 = vpop.permute.xlu1 %170  ;;  %v168_v50 = vpop.permute.xlu0 %167 }
 0x301   :  { %v173_v51 = vperm.slane %v171_v49, %v120_v21  ;;  %v172_v52 = vperm.slane %v168_v50, %v120_v21 }
 0x303   :  { %v174_v53 = vsel %vm123_vm2, %v173_v51, %v172_v52 }
 0x304   :  { %176 = vst.msk [vmem:[#allocation8] sm:$0x3] %vm126_vm3, %v174_v53 }
 0x305   :  { %187 = dma.vmem_to_hbm [thread:$0]  %s183_s7, 32, %s185_s10, [#allocation4]  }
 0x306   :  { %320 = dma.done.wait [#allocation4], 32  }
 0x307   :  { %321 = vsyncadd [#allocation4], 4294967264 }
 0x308   :  { %192 = vsyncpa [#allocation3], 1 }
 0x309   :  { %193 = vsyncpa [#allocation6], 1 }
 0x30a   :  { %194 = vsyncpa [#allocation4], 1 }

</bundles_post_ra>
